<compile_context>
chip_gen: v7x
topology: tpu7x:2x2x1
jax: 0.10.0
libtpu: 0.0.40
codegen_flags: <defaults>
</compile_context>

<pallas_src>
import functools

import jax
import jax.numpy as jnp
from jax.experimental import pallas as pl
from jax.experimental.pallas import tpu as pltpu


def _round_up(x, m):
    return ((x + m - 1) // m) * m


_BATCH_TILE = 8  # sublane-sized batch tile; one grid step per tile (parallel axis)


def rnn_decoder_kernel(latent_ref, wi_t_ref, wh_t_ref, bh_ref, wo_t_ref,
                       out_ref, *, seq_len):
    latent = latent_ref[...]               # (TB, dLp)
    wi_t = wi_t_ref[...]                   # (dLp, Hp)  pre-transposed
    wh_t = wh_t_ref[...]                   # (Hp, Hp)   pre-transposed
    wo_t = wo_t_ref[...]                   # (Hp, dOp)  pre-transposed
    bh = bh_ref[...]                       # (1, Hp)

    # Input projection + bias are constant across time (latent expanded over seq).
    # Note: padded batch rows also get the broadcast bias -> nonzero (harmless)
    # work; those rows are sliced off in the wrapper.
    base = jnp.dot(latent, wi_t, preferred_element_type=jnp.float32) + bh   # (TB, Hp)

    # h_1 = relu(0 @ Wh + base) = relu(base): skip the first (zero) matmul.
    h = jnp.maximum(base, 0.0)
    # Interleaved output projection: independent matmul + lane-dense store per
    # step hides under the dependent h @ Wh chain (max-not-sum on the MXU slot).
    out_ref[0, :, :] = jnp.dot(
        h, wo_t, preferred_element_type=jnp.float32).astype(out_ref.dtype)
    for t in range(1, seq_len):            # static unroll of the recurrence
        h = jnp.maximum(
            jnp.dot(h, wh_t, preferred_element_type=jnp.float32) + base, 0.0)
        out_ref[t, :, :] = jnp.dot(
            h, wo_t, preferred_element_type=jnp.float32).astype(out_ref.dtype)


def prepare_rnn_decoder_params(w_i2h, w_h2h, b_h2h, w_h2o):
    """Pad + transpose the RNN weights ONCE at init time (off the hot path).

    Zero padding is exact: padded hidden units have zero incoming/outgoing
    weights and zero bias, so they never contribute to real outputs.
    Returns (padded_params, dims) where dims=(d_latent, d_hidden, d_output).
    """
    H, dL = w_i2h.shape
    dO = w_h2o.shape[0]
    Hp = _round_up(H, 128)
    dLp = _round_up(dL, 128)
    dOp = _round_up(dO, 128)

    f32 = jnp.float32
    wi_t = jnp.zeros((dLp, Hp), f32).at[:dL, :H].set(jnp.asarray(w_i2h, f32).T)
    wh_t = jnp.zeros((Hp, Hp), f32).at[:H, :H].set(jnp.asarray(w_h2h, f32).T)
    bh = jnp.zeros((1, Hp), f32).at[0, :H].set(jnp.asarray(b_h2h, f32))
    wo_t = jnp.zeros((Hp, dOp), f32).at[:H, :dO].set(jnp.asarray(w_h2o, f32).T)
    return (wi_t, wh_t, bh, wo_t), (dL, H, dO)


@functools.partial(jax.jit, static_argnames=("sequence_length", "dims"))
def rnn_decoder_forward(latent, padded_params, *, sequence_length, dims):
    """latent: (B, d_latent). Returns output (sequence_length, B, d_output)."""
    wi_t, wh_t, bh, wo_t = padded_params
    dL, H, dO = dims
    B = latent.shape[0]
    dLp, Hp = wi_t.shape
    dOp = wo_t.shape[1]

    TB = _BATCH_TILE
    Bp = _round_up(max(B, 1), TB)
    n_btiles = Bp // TB

    f32 = jnp.float32
    latent_p = jnp.zeros((Bp, dLp), f32).at[:B, :dL].set(latent.astype(f32))

    grid_spec = pltpu.PrefetchScalarGridSpec(
        num_scalar_prefetch=0,
        grid=(n_btiles,),
        in_specs=[
            pl.BlockSpec((TB, dLp), lambda b: (b, 0)),   # latent: per batch tile
            pl.BlockSpec((dLp, Hp), lambda b: (0, 0)),   # weights: same block every tile
            pl.BlockSpec((Hp, Hp), lambda b: (0, 0)),
            pl.BlockSpec((1, Hp), lambda b: (0, 0)),
            pl.BlockSpec((Hp, dOp), lambda b: (0, 0)),
        ],
        out_specs=pl.BlockSpec((sequence_length, TB, dOp), lambda b: (0, b, 0)),
    )

    out = pl.pallas_call(
        functools.partial(rnn_decoder_kernel, seq_len=sequence_length),
        out_shape=jax.ShapeDtypeStruct((sequence_length, Bp, dOp), f32),
        grid_spec=grid_spec,
        compiler_params=pltpu.CompilerParams(
            # Batch tiles are independent sequences -> shardable across the two
            # TensorCores on v7x; harmless single-iteration grid on v5e/v6e.
            dimension_semantics=("parallel",)),
    )(latent_p, wi_t, wh_t, bh, wo_t)

    return out[:, :B, :dO].astype(latent.dtype)


def _reference(latent, w_i2h, w_h2h, b_h2h, w_h2o, sequence_length):
    zi = latent @ w_i2h.T
    h = jnp.zeros_like(zi)
    outs = []
    for _ in range(sequence_length):
        h = jnp.maximum(h @ w_h2h.T + b_h2h[None, :] + zi, 0.0)
        outs.append(h @ w_h2o.T)
    return jnp.stack(outs, axis=0)


if __name__ == "__main__":
    # Small, forward-consistent shapes.
    B = 4                 # batch
    d_latent = 8          # RNNDecoder d_latent == RNN d_input
    d_hidden = 32
    d_output = d_latent   # RNNDecoder passes its d_input as the RNN's d_output
    seq_len = 8

    key = jax.random.PRNGKey(0)
    k_lat, k_wi, k_wh, k_bh, k_wo = jax.random.split(key, 5)

    # Deterministic "Lazy"-style init (normal(0, 1/sqrt(f_in))) for weights.
    latent = jax.random.normal(k_lat, (B, d_latent), dtype=jnp.float32)
    w_i2h = jax.random.normal(k_wi, (d_hidden, d_latent), dtype=jnp.float32) / jnp.sqrt(d_latent)
    w_h2h = jax.random.normal(k_wh, (d_hidden, d_hidden), dtype=jnp.float32) / jnp.sqrt(d_hidden)
    b_h2h = jax.random.uniform(
        k_bh, (d_hidden,), dtype=jnp.float32,
        minval=-1.0 / jnp.sqrt(d_hidden), maxval=1.0 / jnp.sqrt(d_hidden))
    w_h2o = jax.random.normal(k_wo, (d_output, d_hidden), dtype=jnp.float32) / jnp.sqrt(d_hidden)

    # Pad/transpose parameters once (init-time), then run the jitted forward.
    padded_params, dims = prepare_rnn_decoder_params(w_i2h, w_h2h, b_h2h, w_h2o)

    out = rnn_decoder_forward(latent, padded_params,
                              sequence_length=seq_len, dims=dims)
    out = jax.block_until_ready(out)

    ref = _reference(latent, w_i2h, w_h2h, b_h2h, w_h2o, seq_len)
    assert out.shape == (seq_len, B, d_output), out.shape
    assert jnp.allclose(out, ref, atol=1e-5, rtol=1e-5), "mismatch vs reference"

    print("KERNEL_OK")
</pallas_src>

<mosaic_0001>
module attributes {stable_mosaic.version = 11 : i64} {
  func.func @rnn_decoder_kernel(%arg0: i32, %arg1: memref<8x128xf32, #tpu.memory_space<vmem>>, %arg2: memref<128x128xf32, #tpu.memory_space<vmem>>, %arg3: memref<128x128xf32, #tpu.memory_space<vmem>>, %arg4: memref<1x128xf32, #tpu.memory_space<vmem>>, %arg5: memref<128x128xf32, #tpu.memory_space<vmem>>, %arg6: memref<8x8x128xf32, #tpu.memory_space<vmem>>) attributes {dimension_semantics = [#tpu.dimension_semantics<parallel>], iteration_bounds = array<i64: 1>, scalar_prefetch = 0 : i64, scratch_operands = 0 : i64, tpu.core_type = #tpu.core_type<tc>, window_params = [{transform_indices = @transform_0, window_bounds = array<i64: 8, 128>}, {pipeline_mode = #tpu.pipeline_mode<synchronous>, transform_indices = @transform_1, window_bounds = array<i64: 128, 128>}, {pipeline_mode = #tpu.pipeline_mode<synchronous>, transform_indices = @transform_2, window_bounds = array<i64: 128, 128>}, {pipeline_mode = #tpu.pipeline_mode<synchronous>, transform_indices = @transform_3, window_bounds = array<i64: 1, 128>}, {pipeline_mode = #tpu.pipeline_mode<synchronous>, transform_indices = @transform_4, window_bounds = array<i64: 128, 128>}, {transform_indices = @transform_5, window_bounds = array<i64: 8, 8, 128>}]} {
    %c0 = arith.constant 0 : index
    %c0_0 = arith.constant 0 : index
    %0 = vector.load %arg1[%c0, %c0_0] : memref<8x128xf32, #tpu.memory_space<vmem>>, vector<8x128xf32>
    %c0_1 = arith.constant 0 : index
    %c0_2 = arith.constant 0 : index
    %1 = vector.load %arg2[%c0_1, %c0_2] : memref<128x128xf32, #tpu.memory_space<vmem>>, vector<128x128xf32>
    %c0_3 = arith.constant 0 : index
    %c0_4 = arith.constant 0 : index
    %2 = vector.load %arg3[%c0_3, %c0_4] : memref<128x128xf32, #tpu.memory_space<vmem>>, vector<128x128xf32>
    %c0_5 = arith.constant 0 : index
    %c0_6 = arith.constant 0 : index
    %3 = vector.load %arg5[%c0_5, %c0_6] : memref<128x128xf32, #tpu.memory_space<vmem>>, vector<128x128xf32>
    %c0_7 = arith.constant 0 : index
    %c0_8 = arith.constant 0 : index
    %4 = vector.load %arg4[%c0_7, %c0_8] : memref<1x128xf32, #tpu.memory_space<vmem>>, vector<1x128xf32>
    %cst = arith.constant dense<0.000000e+00> : vector<8x128xf32>
    %5 = tpu.matmul %0, %1, %cst {dimension_numbers = #tpu.dot_dimension_numbers<[1], [0], [0], [1], [0, 0, 1, 1], [], []>} : vector<8x128xf32>, vector<128x128xf32>, vector<8x128xf32> -> vector<8x128xf32>
    %6 = vector.broadcast %4 : vector<1x128xf32> to vector<8x128xf32>
    %7 = arith.addf %5, %6 : vector<8x128xf32>
    %cst_9 = arith.constant 0.000000e+00 : f32
    %8 = vector.broadcast %cst_9 : f32 to vector<8x128xf32>
    %9 = arith.maximumf %7, %8 : vector<8x128xf32>
    %cst_10 = arith.constant dense<0.000000e+00> : vector<8x128xf32>
    %10 = tpu.matmul %9, %3, %cst_10 {dimension_numbers = #tpu.dot_dimension_numbers<[1], [0], [0], [1], [0, 0, 1, 1], [], []>} : vector<8x128xf32>, vector<128x128xf32>, vector<8x128xf32> -> vector<8x128xf32>
    %c0_11 = arith.constant 0 : index
    %c0_12 = arith.constant 0 : index
    %c0_13 = arith.constant 0 : index
    %11 = vector.load %arg6[%c0_11, %c0_12, %c0_13] : memref<8x8x128xf32, #tpu.memory_space<vmem>>, vector<1x8x128xf32>
    %12 = vector.shape_cast %11 : vector<1x8x128xf32> to vector<8x128xf32>
    %13 = vector.shape_cast %10 : vector<8x128xf32> to vector<1x8x128xf32>
    tpu.vector_store %arg6[%c0_11, %c0_12, %c0_13], %13 {strides = array<i32>} : memref<8x8x128xf32, #tpu.memory_space<vmem>>, vector<1x8x128xf32>,
    %cst_14 = arith.constant dense<0.000000e+00> : vector<8x128xf32>
    %14 = tpu.matmul %9, %2, %cst_14 {dimension_numbers = #tpu.dot_dimension_numbers<[1], [0], [0], [1], [0, 0, 1, 1], [], []>} : vector<8x128xf32>, vector<128x128xf32>, vector<8x128xf32> -> vector<8x128xf32>
    %15 = arith.addf %14, %7 : vector<8x128xf32>
    %cst_15 = arith.constant 0.000000e+00 : f32
    %16 = vector.broadcast %cst_15 : f32 to vector<8x128xf32>
    %17 = arith.maximumf %15, %16 : vector<8x128xf32>
    %cst_16 = arith.constant dense<0.000000e+00> : vector<8x128xf32>
    %18 = tpu.matmul %17, %3, %cst_16 {dimension_numbers = #tpu.dot_dimension_numbers<[1], [0], [0], [1], [0, 0, 1, 1], [], []>} : vector<8x128xf32>, vector<128x128xf32>, vector<8x128xf32> -> vector<8x128xf32>
    %c1 = arith.constant 1 : index
    %c0_17 = arith.constant 0 : index
    %c0_18 = arith.constant 0 : index
    %19 = vector.load %arg6[%c1, %c0_17, %c0_18] : memref<8x8x128xf32, #tpu.memory_space<vmem>>, vector<1x8x128xf32>
    %20 = vector.shape_cast %19 : vector<1x8x128xf32> to vector<8x128xf32>
    %21 = vector.shape_cast %18 : vector<8x128xf32> to vector<1x8x128xf32>
    tpu.vector_store %arg6[%c1, %c0_17, %c0_18], %21 {strides = array<i32>} : memref<8x8x128xf32, #tpu.memory_space<vmem>>, vector<1x8x128xf32>,
    %cst_19 = arith.constant dense<0.000000e+00> : vector<8x128xf32>
    %22 = tpu.matmul %17, %2, %cst_19 {dimension_numbers = #tpu.dot_dimension_numbers<[1], [0], [0], [1], [0, 0, 1, 1], [], []>} : vector<8x128xf32>, vector<128x128xf32>, vector<8x128xf32> -> vector<8x128xf32>
    %23 = arith.addf %22, %7 : vector<8x128xf32>
    %cst_20 = arith.constant 0.000000e+00 : f32
    %24 = vector.broadcast %cst_20 : f32 to vector<8x128xf32>
    %25 = arith.maximumf %23, %24 : vector<8x128xf32>
    %cst_21 = arith.constant dense<0.000000e+00> : vector<8x128xf32>
    %26 = tpu.matmul %25, %3, %cst_21 {dimension_numbers = #tpu.dot_dimension_numbers<[1], [0], [0], [1], [0, 0, 1, 1], [], []>} : vector<8x128xf32>, vector<128x128xf32>, vector<8x128xf32> -> vector<8x128xf32>
    %c2 = arith.constant 2 : index
    %c0_22 = arith.constant 0 : index
    %c0_23 = arith.constant 0 : index
    %27 = vector.load %arg6[%c2, %c0_22, %c0_23] : memref<8x8x128xf32, #tpu.memory_space<vmem>>, vector<1x8x128xf32>
    %28 = vector.shape_cast %27 : vector<1x8x128xf32> to vector<8x128xf32>
    %29 = vector.shape_cast %26 : vector<8x128xf32> to vector<1x8x128xf32>
    tpu.vector_store %arg6[%c2, %c0_22, %c0_23], %29 {strides = array<i32>} : memref<8x8x128xf32, #tpu.memory_space<vmem>>, vector<1x8x128xf32>,
    %cst_24 = arith.constant dense<0.000000e+00> : vector<8x128xf32>
    %30 = tpu.matmul %25, %2, %cst_24 {dimension_numbers = #tpu.dot_dimension_numbers<[1], [0], [0], [1], [0, 0, 1, 1], [], []>} : vector<8x128xf32>, vector<128x128xf32>, vector<8x128xf32> -> vector<8x128xf32>
    %31 = arith.addf %30, %7 : vector<8x128xf32>
    %cst_25 = arith.constant 0.000000e+00 : f32
    %32 = vector.broadcast %cst_25 : f32 to vector<8x128xf32>
    %33 = arith.maximumf %31, %32 : vector<8x128xf32>
    %cst_26 = arith.constant dense<0.000000e+00> : vector<8x128xf32>
    %34 = tpu.matmul %33, %3, %cst_26 {dimension_numbers = #tpu.dot_dimension_numbers<[1], [0], [0], [1], [0, 0, 1, 1], [], []>} : vector<8x128xf32>, vector<128x128xf32>, vector<8x128xf32> -> vector<8x128xf32>
    %c3 = arith.constant 3 : index
    %c0_27 = arith.constant 0 : index
    %c0_28 = arith.constant 0 : index
    %35 = vector.load %arg6[%c3, %c0_27, %c0_28] : memref<8x8x128xf32, #tpu.memory_space<vmem>>, vector<1x8x128xf32>
    %36 = vector.shape_cast %35 : vector<1x8x128xf32> to vector<8x128xf32>
    %37 = vector.shape_cast %34 : vector<8x128xf32> to vector<1x8x128xf32>
    tpu.vector_store %arg6[%c3, %c0_27, %c0_28], %37 {strides = array<i32>} : memref<8x8x128xf32, #tpu.memory_space<vmem>>, vector<1x8x128xf32>,
    %cst_29 = arith.constant dense<0.000000e+00> : vector<8x128xf32>
    %38 = tpu.matmul %33, %2, %cst_29 {dimension_numbers = #tpu.dot_dimension_numbers<[1], [0], [0], [1], [0, 0, 1, 1], [], []>} : vector<8x128xf32>, vector<128x128xf32>, vector<8x128xf32> -> vector<8x128xf32>
    %39 = arith.addf %38, %7 : vector<8x128xf32>
    %cst_30 = arith.constant 0.000000e+00 : f32
    %40 = vector.broadcast %cst_30 : f32 to vector<8x128xf32>
    %41 = arith.maximumf %39, %40 : vector<8x128xf32>
    %cst_31 = arith.constant dense<0.000000e+00> : vector<8x128xf32>
    %42 = tpu.matmul %41, %3, %cst_31 {dimension_numbers = #tpu.dot_dimension_numbers<[1], [0], [0], [1], [0, 0, 1, 1], [], []>} : vector<8x128xf32>, vector<128x128xf32>, vector<8x128xf32> -> vector<8x128xf32>
    %c4 = arith.constant 4 : index
    %c0_32 = arith.constant 0 : index
    %c0_33 = arith.constant 0 : index
    %43 = vector.load %arg6[%c4, %c0_32, %c0_33] : memref<8x8x128xf32, #tpu.memory_space<vmem>>, vector<1x8x128xf32>
    %44 = vector.shape_cast %43 : vector<1x8x128xf32> to vector<8x128xf32>
    %45 = vector.shape_cast %42 : vector<8x128xf32> to vector<1x8x128xf32>
    tpu.vector_store %arg6[%c4, %c0_32, %c0_33], %45 {strides = array<i32>} : memref<8x8x128xf32, #tpu.memory_space<vmem>>, vector<1x8x128xf32>,
    %cst_34 = arith.constant dense<0.000000e+00> : vector<8x128xf32>
    %46 = tpu.matmul %41, %2, %cst_34 {dimension_numbers = #tpu.dot_dimension_numbers<[1], [0], [0], [1], [0, 0, 1, 1], [], []>} : vector<8x128xf32>, vector<128x128xf32>, vector<8x128xf32> -> vector<8x128xf32>
    %47 = arith.addf %46, %7 : vector<8x128xf32>
    %cst_35 = arith.constant 0.000000e+00 : f32
    %48 = vector.broadcast %cst_35 : f32 to vector<8x128xf32>
    %49 = arith.maximumf %47, %48 : vector<8x128xf32>
    %cst_36 = arith.constant dense<0.000000e+00> : vector<8x128xf32>
    %50 = tpu.matmul %49, %3, %cst_36 {dimension_numbers = #tpu.dot_dimension_numbers<[1], [0], [0], [1], [0, 0, 1, 1], [], []>} : vector<8x128xf32>, vector<128x128xf32>, vector<8x128xf32> -> vector<8x128xf32>
    %c5 = arith.constant 5 : index
    %c0_37 = arith.constant 0 : index
    %c0_38 = arith.constant 0 : index
    %51 = vector.load %arg6[%c5, %c0_37, %c0_38] : memref<8x8x128xf32, #tpu.memory_space<vmem>>, vector<1x8x128xf32>
    %52 = vector.shape_cast %51 : vector<1x8x128xf32> to vector<8x128xf32>
    %53 = vector.shape_cast %50 : vector<8x128xf32> to vector<1x8x128xf32>
    tpu.vector_store %arg6[%c5, %c0_37, %c0_38], %53 {strides = array<i32>} : memref<8x8x128xf32, #tpu.memory_space<vmem>>, vector<1x8x128xf32>,
    %cst_39 = arith.constant dense<0.000000e+00> : vector<8x128xf32>
    %54 = tpu.matmul %49, %2, %cst_39 {dimension_numbers = #tpu.dot_dimension_numbers<[1], [0], [0], [1], [0, 0, 1, 1], [], []>} : vector<8x128xf32>, vector<128x128xf32>, vector<8x128xf32> -> vector<8x128xf32>
    %55 = arith.addf %54, %7 : vector<8x128xf32>
    %cst_40 = arith.constant 0.000000e+00 : f32
    %56 = vector.broadcast %cst_40 : f32 to vector<8x128xf32>
    %57 = arith.maximumf %55, %56 : vector<8x128xf32>
    %cst_41 = arith.constant dense<0.000000e+00> : vector<8x128xf32>
    %58 = tpu.matmul %57, %3, %cst_41 {dimension_numbers = #tpu.dot_dimension_numbers<[1], [0], [0], [1], [0, 0, 1, 1], [], []>} : vector<8x128xf32>, vector<128x128xf32>, vector<8x128xf32> -> vector<8x128xf32>
    %c6 = arith.constant 6 : index
    %c0_42 = arith.constant 0 : index
    %c0_43 = arith.constant 0 : index
    %59 = vector.load %arg6[%c6, %c0_42, %c0_43] : memref<8x8x128xf32, #tpu.memory_space<vmem>>, vector<1x8x128xf32>
    %60 = vector.shape_cast %59 : vector<1x8x128xf32> to vector<8x128xf32>
    %61 = vector.shape_cast %58 : vector<8x128xf32> to vector<1x8x128xf32>
    tpu.vector_store %arg6[%c6, %c0_42, %c0_43], %61 {strides = array<i32>} : memref<8x8x128xf32, #tpu.memory_space<vmem>>, vector<1x8x128xf32>,
    %cst_44 = arith.constant dense<0.000000e+00> : vector<8x128xf32>
    %62 = tpu.matmul %57, %2, %cst_44 {dimension_numbers = #tpu.dot_dimension_numbers<[1], [0], [0], [1], [0, 0, 1, 1], [], []>} : vector<8x128xf32>, vector<128x128xf32>, vector<8x128xf32> -> vector<8x128xf32>
    %63 = arith.addf %62, %7 : vector<8x128xf32>
    %cst_45 = arith.constant 0.000000e+00 : f32
    %64 = vector.broadcast %cst_45 : f32 to vector<8x128xf32>
    %65 = arith.maximumf %63, %64 : vector<8x128xf32>
    %cst_46 = arith.constant dense<0.000000e+00> : vector<8x128xf32>
    %66 = tpu.matmul %65, %3, %cst_46 {dimension_numbers = #tpu.dot_dimension_numbers<[1], [0], [0], [1], [0, 0, 1, 1], [], []>} : vector<8x128xf32>, vector<128x128xf32>, vector<8x128xf32> -> vector<8x128xf32>
    %c7 = arith.constant 7 : index
    %c0_47 = arith.constant 0 : index
    %c0_48 = arith.constant 0 : index
    %67 = vector.load %arg6[%c7, %c0_47, %c0_48] : memref<8x8x128xf32, #tpu.memory_space<vmem>>, vector<1x8x128xf32>
    %68 = vector.shape_cast %67 : vector<1x8x128xf32> to vector<8x128xf32>
    %69 = vector.shape_cast %66 : vector<8x128xf32> to vector<1x8x128xf32>
    tpu.vector_store %arg6[%c7, %c0_47, %c0_48], %69 {strides = array<i32>} : memref<8x8x128xf32, #tpu.memory_space<vmem>>, vector<1x8x128xf32>,
    return
  }
  func.func @transform_0(%arg0: i32) -> (i32, i32) {
    %c0_i32 = arith.constant 0 : i32
    %c0_i32_0 = arith.constant 0 : i32
    return %arg0, %c0_i32 : i32, i32
  }
  func.func @transform_1(%arg0: i32) -> (i32, i32) {
    %c0_i32 = arith.constant 0 : i32
    %c0_i32_0 = arith.constant 0 : i32
    %c0_i32_1 = arith.constant 0 : i32
    return %c0_i32, %c0_i32_0 : i32, i32
  }
  func.func @transform_2(%arg0: i32) -> (i32, i32) {
    %c0_i32 = arith.constant 0 : i32
    %c0_i32_0 = arith.constant 0 : i32
    %c0_i32_1 = arith.constant 0 : i32
    return %c0_i32, %c0_i32_0 : i32, i32
  }
  func.func @transform_3(%arg0: i32) -> (i32, i32) {
    %c0_i32 = arith.constant 0 : i32
    %c0_i32_0 = arith.constant 0 : i32
    %c0_i32_1 = arith.constant 0 : i32
    return %c0_i32, %c0_i32_0 : i32, i32
  }
  func.func @transform_4(%arg0: i32) -> (i32, i32) {
    %c0_i32 = arith.constant 0 : i32
    %c0_i32_0 = arith.constant 0 : i32
    %c0_i32_1 = arith.constant 0 : i32
    return %c0_i32, %c0_i32_0 : i32, i32
  }
  func.func @transform_5(%arg0: i32) -> (i32, i32, i32) {
    %c0_i32 = arith.constant 0 : i32
    %c0_i32_0 = arith.constant 0 : i32
    %c0_i32_1 = arith.constant 0 : i32
    return %c0_i32, %arg0, %c0_i32_0 : i32, i32, i32
  }
}

</mosaic_0001>

<bundles_post_ra>
// kernel: rnn_decoder_forward.1
= control target key start
LH: loop header
LB: loop body
LE: loop exit
PB: predicated region body
PF: predicated region fallthrough
CT: control target
= control target key end

     0   :  { %10 = vsyncpa [#allocation3], 0  ;;  %s3010_s0 = inlined_call_operand.vmem [shape: f32[8,128], index: 0, kind: input, shape index: {}]   ;;  %s3011_s1 = inlined_call_operand.hbm [shape: f32[128,128], index: 1, kind: input, shape index: {}]   ;;  %s3012_s2 = inlined_call_operand.hbm [shape: f32[128,128], index: 2, kind: input, shape index: {}]   ;;  %s3013_s3 = inlined_call_operand.vmem [shape: f32[1,128], index: 3, kind: input, shape index: {}]   ;;  %s3014_s4 = inlined_call_operand.hbm [shape: f32[128,128], index: 4, kind: input, shape index: {}]   ;;  %s3015_s5 = inlined_call_operand.vmem [shape: f32[8,8,128], index: 5, kind: output, shape index: {}]  }
   0x1   :  { %11 = vsyncpa [#allocation5], 0  ;;  %s2568_s18 = smov [#allocation4]   ;;  %s2569_s20 = smov [#allocation2]  }
   0x2   :  { %s31_s19 = sshll.u32 %s2568_s18, 4  ;;  %s19_s21 = sshll.u32 %s2569_s20, 4  ;;  %s32_s19 = int_to_ptr.vmem [resolvable:$true] %s31_s19  ;;  %s2606_s21 = int_to_ptr.vmem [resolvable:$true] %s19_s21 }
   0x3   :  { %s2498_s24 = scalar_lea.hbm %s3012_s2, 2048 }
   0x4   :  { %p2499_p0 = scmp.ne.s32.totalorder %s3012_s2, %s2498_s24  ;;  %p2502_p1 = scmp.lt.u32.totalorder %s2498_s24, %s3012_s2 }
   0x6   :  { %p2504_p2 = pnand %p2502_p1, %p2499_p0 }
   0x8   :  { %2507 = shalt.err (!%p2504_p2)
}
   0x9   :  { %s2508_s29 = scalar_lea.vmem %s32_s19, 2048  ;;  %p2513_p4 = scmp.lt.s32.totalorder %s32_s19, %s32_s19 }
   0xa   :  { %p2509_p3 = scmp.ne.s32.totalorder %s32_s19, %s2508_s29  ;;  %p2514_p5 = scmp.lt.s32.totalorder %s2508_s29, %s2508_s29 }
   0xc   :  { %p2515_p6 = por %p2514_p5, %p2513_p4 }
   0xe   :  { %p2516_p7 = pnand %p2515_p6, %p2509_p3 }
  0x10   :  { %2519 = shalt.err (!%p2516_p7)
}
  0x11   :  { %s2570_s30 = smov 128   ;;  %s2571_s6 = smov 8  }
  0x12   :  { %37 = dma.hbm_to_vmem [thread:$0]  %s3012_s2, 2048, %s32_s19, [#allocation5], %s2570_s30, %s2570_s30, %s2571_s6  }
  0x13   :  { %s2520_s11 = scalar_lea.hbm %s3011_s1, 2048 }
  0x14   :  { %p2521_p8 = scmp.ne.s32.totalorder %s3011_s1, %s2520_s11  ;;  %p2524_p9 = scmp.lt.u32.totalorder %s2520_s11, %s3011_s1 }
  0x16   :  { %p2526_p10 = pnand %p2524_p9, %p2521_p8 }
  0x18   :  { %2529 = shalt.err (!%p2526_p10)
}
  0x19   :  { %s2530_s16 = scalar_lea.vmem %s2606_s21, 2048  ;;  %p2535_p12 = scmp.lt.s32.totalorder %s2606_s21, %s2606_s21 }
  0x1a   :  { %p2531_p11 = scmp.ne.s32.totalorder %s2606_s21, %s2530_s16  ;;  %p2536_p13 = scmp.lt.s32.totalorder %s2530_s16, %s2530_s16 }
  0x1c   :  { %p2537_p0 = por %p2536_p13, %p2535_p12 }
  0x1e   :  { %p2538_p1 = pnand %p2537_p0, %p2531_p11 }
  0x20   :  { %2541 = shalt.err (!%p2538_p1)
}
  0x21   :  { %25 = dma.hbm_to_vmem [thread:$0]  %s3011_s1, 2048, %s2606_s21, [#allocation3], %s2570_s30, %s2570_s30, %s2571_s6  }
  0x22   :  { %s2572_s18 = smov [#allocation6]   ;;  %s2542_s23 = scalar_lea.hbm %s3014_s4, 2048 }
  0x23   :  { %s45_s19 = sshll.u32 %s2572_s18, 4  ;;  %p2543_p2 = scmp.ne.s32.totalorder %s3014_s4, %s2542_s23  ;;  %s46_s19 = int_to_ptr.vmem [resolvable:$true] %s45_s19 }
  0x24   :  { %p2546_p3 = scmp.lt.u32.totalorder %s2542_s23, %s3014_s4 }
  0x26   :  { %p2548_p4 = pnand %p2546_p3, %p2543_p2 }
  0x28   :  { %2551 = shalt.err (!%p2548_p4)
}
  0x29   :  { %s2552_s28 = scalar_lea.vmem %s46_s19, 2048  ;;  %p2557_p6 = scmp.lt.s32.totalorder %s46_s19, %s46_s19 }
  0x2a   :  { %p2553_p5 = scmp.ne.s32.totalorder %s46_s19, %s2552_s28  ;;  %p2558_p7 = scmp.lt.s32.totalorder %s2552_s28, %s2552_s28 }
  0x2c   :  { %p2559_p8 = por %p2558_p7, %p2557_p6 }
  0x2e   :  { %p2560_p9 = pnand %p2559_p8, %p2553_p5 }
  0x30   :  { %2563 = shalt.err (!%p2560_p9)
}
  0x31   :  { %51 = dma.hbm_to_vmem [thread:$0]  %s3014_s4, 2048, %s46_s19, [#allocation5], %s2570_s30, %s2570_s30, %s2571_s6  }
  0x32   :  { %2564 = dma.done.wait [#allocation3], 2048  }
  0x33   :  { %2565 = vsyncadd [#allocation3], 4294965248 }
  0x34   :  { %2566 = dma.done.wait [#allocation5], 4096  }
  0x35   :  { %2567 = vsyncadd [#allocation5], 4294963200  ;;  %v2573_v0 = vmov 0.0|0.0   ;;  %vm2574_vm0 = vmmov 0   ;;  %v2575_v1 = vmov 0.0   ;;  %v62_v2 = vld [vmem:[#allocation2] sm:$0xff] }
  0x36   :  { %2106 = vmatprep.subr.bf16.mxu0 %v2573_v0  ;;  %1578 = vmatprep.mubr.msk.f32.mxu0 %vm2574_vm0, %v2575_v1  ;;  %v63_v3 = vld [vmem:[#allocation2 + $0x8] sm:$0xff]  ;;  %v64_v4 = vld [vmem:[#allocation2 + $0x10] sm:$0xff]  ;;  %v65_v6 = vld [vmem:[#allocation2 + $0x18] sm:$0xff] }
  0x37   :  { %2130 = vmatprep.subr.bf16.mxu1 %v2573_v0  ;;  %1613 = vmatprep.mubr.msk.f32.mxu1 %vm2574_vm0, %v2575_v1  ;;  %v2107_v5 = vpack.c.bf16 %v63_v3, %v62_v2  ;;  %v2110_v7 = vpack.c.bf16 %v65_v6, %v64_v4  ;;  %v66_v8 = vld [vmem:[#allocation2 + $0x20] sm:$0xff]  ;;  %v67_v9 = vld [vmem:[#allocation2 + $0x28] sm:$0xff]  ;;  %v96_v14 = vld [vmem:[#allocation6 + $0x10] sm:$0xff] }
  0x38   :  { %v94_v10 = vld [vmem:[#allocation6] sm:$0xff]  ;;  %v95_v11 = vld [vmem:[#allocation6 + $0x8] sm:$0xff]  ;;  %v2113_v12 = vpack.c.bf16 %v67_v9, %v66_v8  ;;  %v97_v15 = vld [vmem:[#allocation6 + $0x18] sm:$0xff] }
  0x39   :  { %2108 = vmatpush3.bf16.msra.mxu0 %v2107_v5  ;;  %v2665_v13 = vpack.c.bf16 %v95_v11, %v94_v10  ;;  %v68_v16 = vld [vmem:[#allocation2 + $0x30] sm:$0xff]  ;;  %v69_v17 = vld [vmem:[#allocation2 + $0x38] sm:$0xff]  ;;  %v2669_v18 = vpack.c.bf16 %v97_v15, %v96_v14  ;;  %v98_v19 = vld [vmem:[#allocation6 + $0x20] sm:$0xff] }
  0x3a   :  { %2109 = vmatprep.subr.bf16.mxu0 %v2573_v0  ;;  %v99_v20 = vld [vmem:[#allocation6 + $0x28] sm:$0xff]  ;;  %v2116_v21 = vpack.c.bf16 %v69_v17, %v68_v16  ;;  %v70_v22 = vld [vmem:[#allocation2 + $0x40] sm:$0xff]  ;;  %v100_v25 = vld [vmem:[#allocation6 + $0x30] sm:$0xff] }
  0x3b   :  { %2132 = vmatpush3.bf16.msra.mxu1 %v2665_v13  ;;  %v71_v23 = vld [vmem:[#allocation2 + $0x48] sm:$0xff]  ;;  %v2674_v24 = vpack.c.bf16 %v99_v20, %v98_v19  ;;  %v101_v26 = vld [vmem:[#allocation6 + $0x38] sm:$0xff]  ;;  %v72_v28 = vld [vmem:[#allocation2 + $0x50] sm:$0xff] }
  0x3c   :  { %2133 = vmatprep.subr.bf16.mxu1 %v2573_v0  ;;  %v2119_v27 = vpack.c.bf16 %v71_v23, %v70_v22  ;;  %v73_v29 = vld [vmem:[#allocation2 + $0x58] sm:$0xff]  ;;  %v2679_v30 = vpack.c.bf16 %v101_v26, %v100_v25  ;;  %v102_v31 = vld [vmem:[#allocation6 + $0x40] sm:$0xff]  ;;  %v103_v32 = vld [vmem:[#allocation6 + $0x48] sm:$0xff] }
  0x3d   :  { %2111 = vmatpush3.bf16.msra.mxu0 %v2110_v7  ;;  %v2122_v33 = vpack.c.bf16 %v73_v29, %v72_v28  ;;  %v74_v34 = vld [vmem:[#allocation2 + $0x60] sm:$0xff]  ;;  %v75_v35 = vld [vmem:[#allocation2 + $0x68] sm:$0xff]  ;;  %v2684_v36 = vpack.c.bf16 %v103_v32, %v102_v31  ;;  %v104_v37 = vld [vmem:[#allocation6 + $0x50] sm:$0xff] }
  0x3e   :  { %2112 = vmatprep.subr.bf16.mxu0 %v2573_v0  ;;  %v105_v38 = vld [vmem:[#allocation6 + $0x58] sm:$0xff]  ;;  %v2125_v39 = vpack.c.bf16 %v75_v35, %v74_v34  ;;  %v76_v40 = vld [vmem:[#allocation2 + $0x70] sm:$0xff]  ;;  %v106_v43 = vld [vmem:[#allocation6 + $0x60] sm:$0xff] }
  0x3f   :  { %2135 = vmatpush3.bf16.msra.mxu1 %v2669_v18  ;;  %v77_v41 = vld [vmem:[#allocation2 + $0x78] sm:$0xff]  ;;  %v2689_v42 = vpack.c.bf16 %v105_v38, %v104_v37  ;;  %v107_v44 = vld [vmem:[#allocation6 + $0x68] sm:$0xff]  ;;  %v78_v46 = vld [vmem:[#allocation4] sm:$0xff] }
  0x40   :  { %2136 = vmatprep.subr.bf16.mxu1 %v2573_v0  ;;  %v2128_v45 = vpack.c.bf16 %v77_v41, %v76_v40  ;;  %v79_v47 = vld [vmem:[#allocation4 + $0x8] sm:$0xff]  ;;  %v2694_v48 = vpack.c.bf16 %v107_v44, %v106_v43  ;;  %v61_v49 = vld [vmem:[%s3010_s0] sm:$0xff]  ;;  %v80_v51 = vld [vmem:[#allocation4 + $0x10] sm:$0xff] }
  0x41   :  { %2114 = vmatpush3.bf16.msra.mxu0 %v2113_v12  ;;  %v2700_v50 = vpack.c.bf16 %v79_v47, %v78_v46  ;;  %v81_v52 = vld [vmem:[#allocation4 + $0x18] sm:$0xff]  ;;  %v82_v54 = vld [vmem:[#allocation4 + $0x20] sm:$0xff]  ;;  %v83_v55 = vld [vmem:[#allocation4 + $0x28] sm:$0xff] }
  0x42   :  { %2115 = vmatprep.subr.bf16.mxu0 %v2573_v0  ;;  %v2706_v53 = vpack.c.bf16 %v81_v52, %v80_v51  ;;  %v2712_v56 = vpack.c.bf16 %v83_v55, %v82_v54  ;;  %v84_v57 = vld [vmem:[#allocation4 + $0x30] sm:$0xff]  ;;  %v85_v58 = vld [vmem:[#allocation4 + $0x38] sm:$0xff]  ;;  %v86_v60 = vld [vmem:[#allocation4 + $0x40] sm:$0xff] }
  0x43   :  { %2138 = vmatpush3.bf16.msra.mxu1 %v2674_v24  ;;  %v2716_v59 = vpack.c.bf16 %v85_v58, %v84_v57  ;;  %v87_v61 = vld [vmem:[#allocation4 + $0x48] sm:$0xff]  ;;  %v88_v63 = vld [vmem:[#allocation4 + $0x50] sm:$0xff]  ;;  %v89_v2 = vld [vmem:[#allocation4 + $0x58] sm:$0xff] }
  0x44   :  { %2139 = vmatprep.subr.bf16.mxu1 %v2573_v0  ;;  %v2720_v62 = vpack.c.bf16 %v87_v61, %v86_v60  ;;  %v2724_v3 = vpack.c.bf16 %v89_v2, %v88_v63  ;;  %v90_v4 = vld [vmem:[#allocation4 + $0x60] sm:$0xff]  ;;  %v91_v5 = vld [vmem:[#allocation4 + $0x68] sm:$0xff]  ;;  %v108_v7 = vld [vmem:[#allocation6 + $0x70] sm:$0xff] }
  0x45   :  { %2117 = vmatpush3.bf16.msra.mxu0 %v2116_v21  ;;  %v2728_v6 = vpack.c.bf16 %v91_v5, %v90_v4  ;;  %v109_v8 = vld [vmem:[#allocation6 + $0x78] sm:$0xff]  ;;  %v92_v9 = vld [vmem:[#allocation4 + $0x70] sm:$0xff]  ;;  %v1266_v14 = vld [vmem:[%s3013_s3] ss:$0 sm:$0xff] }
  0x46   :  { %2118 = vmatprep.subr.bf16.mxu0 %v2573_v0  ;;  %v2733_v10 = vpack.c.bf16 %v109_v8, %v108_v7  ;;  %v93_v11 = vld [vmem:[#allocation4 + $0x78] sm:$0xff] }
  0x47   :  { %2141 = vmatpush3.bf16.msra.mxu1 %v2679_v30  ;;  %v2735_v12 = vpack.c.bf16 %v93_v11, %v92_v9 }
  0x48   :  { %2142 = vmatprep.subr.bf16.mxu1 %v2573_v0 }
  0x49   :  { %2120 = vmatpush3.bf16.msra.mxu0 %v2119_v27 }
  0x4a   :  { %2121 = vmatprep.subr.bf16.mxu0 %v2573_v0 }
  0x4b   :  { %2144 = vmatpush3.bf16.msra.mxu1 %v2684_v36 }
  0x4c   :  { %2145 = vmatprep.subr.bf16.mxu1 %v2573_v0 }
  0x4d   :  { %2123 = vmatpush3.bf16.msra.mxu0 %v2122_v33 }
  0x4e   :  { %2124 = vmatprep.subr.bf16.mxu0 %v2573_v0 }
  0x4f   :  { %2147 = vmatpush3.bf16.msra.mxu1 %v2689_v42 }
  0x50   :  { %2148 = vmatprep.subr.bf16.mxu1 %v2573_v0 }
  0x51   :  { %2126 = vmatpush3.bf16.msra.mxu0 %v2125_v39 }
  0x52   :  { %2127 = vmatprep.subr.bf16.mxu0 %v2573_v0 }
  0x53   :  { %2150 = vmatpush3.bf16.msra.mxu1 %v2694_v48 }
  0x54   :  { %2151 = vmatprep.subr.bf16.mxu1 %v2573_v0 }
  0x55   :  { %2129 = vmatpush3.bf16.msra.mxu0 %v2128_v45 }
  0x56   :  { %2154 = vmatprep.subr.bf16.mxu0 %v2573_v0 }
  0x57   :  { %2153 = vmatpush3.bf16.msra.mxu1 %v2733_v10 }
  0x58   :  { %1579 = vmatmul.mubr.f32.vlgmr.msra.gmra.mrb[0].mxu0 %v61_v49  ;;  %2178 = vmatprep.subr.bf16.mxu1 %v2573_v0 }
  0x59   :  { %2156 = vmatpush3.bf16.msra.mxu0 %v2700_v50  ;;  %1648 = vmatprep.mubr.msk.f32.mxu0 %vm2574_vm0, %v2575_v1 }
  0x5a   :  { %2157 = vmatprep.subr.bf16.mxu0 %v2573_v0 }
  0x5d   :  { %2159 = vmatpush3.bf16.msra.mxu0 %v2706_v53 }
  0x5e   :  { %2160 = vmatprep.subr.bf16.mxu0 %v2573_v0 }
  0x61   :  { %2162 = vmatpush3.bf16.msra.mxu0 %v2712_v56 }
  0x62   :  { %2163 = vmatprep.subr.bf16.mxu0 %v2573_v0 }
  0x65   :  { %2165 = vmatpush3.bf16.msra.mxu0 %v2716_v59 }
  0x66   :  { %2166 = vmatprep.subr.bf16.mxu0 %v2573_v0 }
  0x69   :  { %2168 = vmatpush3.bf16.msra.mxu0 %v2720_v62 }
  0x6a   :  { %2169 = vmatprep.subr.bf16.mxu0 %v2573_v0 }
  0x6d   :  { %2171 = vmatpush3.bf16.msra.mxu0 %v2724_v3 }
  0x6e   :  { %2172 = vmatprep.subr.bf16.mxu0 %v2573_v0 }
  0x71   :  { %2174 = vmatpush3.bf16.msra.mxu0 %v2728_v6 }
  0x72   :  { %2175 = vmatprep.subr.bf16.mxu0 %v2573_v0 }
  0x75   :  { %2177 = vmatpush3.bf16.msra.mxu0 %v2735_v12 }
  0x76   :  { %2202 = vmatprep.subr.bf16.mxu0 %v2573_v0 }
 0x12b   :  { %v183_v15 = vpop.f32.mrb[0].mxu0 }
 0x12c   :  { %v2744_v16 = vadd.f32 %v1266_v14, %v183_v15  ;;  %v1580_v17 = vpop.f32.mrb[1].mxu0 }
 0x12e   :  { %v187_v19 = vmax.f32 %v2744_v16, 0.0 }
 0x130   :  { %1614 = vmatmul.mubr.f32.vlgmr.msra.gmra.mrb[0].mxu1 %v187_v19  ;;  %1649 = vmatmul.mubr.f32.vlgmr.msra.gmra.mrb[2].mxu0 %v187_v19 }
 0x131   :  { %2180 = vmatpush3.bf16.msra.mxu1 %v2665_v13  ;;  %2204 = vmatpush3.bf16.msra.mxu0 %v2700_v50 }
 0x132   :  { %2181 = vmatprep.subr.bf16.mxu1 %v2573_v0  ;;  %2205 = vmatprep.subr.bf16.mxu0 %v2573_v0 }
 0x133   :  { %1683 = vmatprep.mubr.msk.f32.mxu1 %vm2574_vm0, %v2575_v1  ;;  %1718 = vmatprep.mubr.msk.f32.mxu0 %vm2574_vm0, %v2575_v1 }
 0x135   :  { %2183 = vmatpush3.bf16.msra.mxu1 %v2669_v18  ;;  %2207 = vmatpush3.bf16.msra.mxu0 %v2706_v53 }
 0x136   :  { %2184 = vmatprep.subr.bf16.mxu1 %v2573_v0  ;;  %2208 = vmatprep.subr.bf16.mxu0 %v2573_v0 }
 0x139   :  { %2186 = vmatpush3.bf16.msra.mxu1 %v2674_v24  ;;  %2210 = vmatpush3.bf16.msra.mxu0 %v2712_v56 }
 0x13a   :  { %2187 = vmatprep.subr.bf16.mxu1 %v2573_v0  ;;  %2211 = vmatprep.subr.bf16.mxu0 %v2573_v0 }
 0x13d   :  { %2189 = vmatpush3.bf16.msra.mxu1 %v2679_v30  ;;  %2213 = vmatpush3.bf16.msra.mxu0 %v2716_v59 }
 0x13e   :  { %2190 = vmatprep.subr.bf16.mxu1 %v2573_v0  ;;  %2214 = vmatprep.subr.bf16.mxu0 %v2573_v0 }
 0x141   :  { %2192 = vmatpush3.bf16.msra.mxu1 %v2684_v36  ;;  %2216 = vmatpush3.bf16.msra.mxu0 %v2720_v62 }
 0x142   :  { %2193 = vmatprep.subr.bf16.mxu1 %v2573_v0  ;;  %2217 = vmatprep.subr.bf16.mxu0 %v2573_v0 }
 0x145   :  { %2195 = vmatpush3.bf16.msra.mxu1 %v2689_v42  ;;  %2219 = vmatpush3.bf16.msra.mxu0 %v2724_v3 }
 0x146   :  { %2196 = vmatprep.subr.bf16.mxu1 %v2573_v0  ;;  %2220 = vmatprep.subr.bf16.mxu0 %v2573_v0 }
 0x149   :  { %2198 = vmatpush3.bf16.msra.mxu1 %v2694_v48  ;;  %2222 = vmatpush3.bf16.msra.mxu0 %v2728_v6 }
 0x14a   :  { %2199 = vmatprep.subr.bf16.mxu1 %v2573_v0  ;;  %2223 = vmatprep.subr.bf16.mxu0 %v2573_v0 }
 0x14d   :  { %2201 = vmatpush3.bf16.msra.mxu1 %v2733_v10  ;;  %2225 = vmatpush3.bf16.msra.mxu0 %v2735_v12 }
 0x14e   :  { %2226 = vmatprep.subr.bf16.mxu1 %v2573_v0  ;;  %2250 = vmatprep.subr.bf16.mxu0 %v2573_v0 }
 0x203   :  { %v254_v20 = vpop.f32.mrb[0].mxu1  ;;  %v325_v21 = vpop.f32.mrb[2].mxu0 }
 0x204   :  { %258 = vst [vmem:[%s3015_s5] sm:$0xff] %v254_v20  ;;  %v326_v22 = vadd.f32 %v325_v21, %v2744_v16  ;;  %v1615_v23 = vpop.f32.mrb[1].mxu1  ;;  %v1650_v25 = vpop.f32.mrb[3].mxu0 }
 0x206   :  { %v329_v26 = vmax.f32 %v326_v22, 0.0 }
 0x208   :  { %1684 = vmatmul.mubr.f32.vlgmr.msra.gmra.mrb[2].mxu1 %v329_v26  ;;  %1719 = vmatmul.mubr.f32.vlgmr.msra.gmra.mrb[4].mxu0 %v329_v26 }
 0x209   :  { %2228 = vmatpush3.bf16.msra.mxu1 %v2665_v13  ;;  %2252 = vmatpush3.bf16.msra.mxu0 %v2700_v50 }
 0x20a   :  { %2229 = vmatprep.subr.bf16.mxu1 %v2573_v0  ;;  %2253 = vmatprep.subr.bf16.mxu0 %v2573_v0 }
 0x20b   :  { %1753 = vmatprep.mubr.msk.f32.mxu1 %vm2574_vm0, %v2575_v1  ;;  %1788 = vmatprep.mubr.msk.f32.mxu0 %vm2574_vm0, %v2575_v1 }
 0x20d   :  { %2231 = vmatpush3.bf16.msra.mxu1 %v2669_v18  ;;  %2255 = vmatpush3.bf16.msra.mxu0 %v2706_v53 }
 0x20e   :  { %2232 = vmatprep.subr.bf16.mxu1 %v2573_v0  ;;  %2256 = vmatprep.subr.bf16.mxu0 %v2573_v0 }
 0x211   :  { %2234 = vmatpush3.bf16.msra.mxu1 %v2674_v24  ;;  %2258 = vmatpush3.bf16.msra.mxu0 %v2712_v56 }
 0x212   :  { %2235 = vmatprep.subr.bf16.mxu1 %v2573_v0  ;;  %2259 = vmatprep.subr.bf16.mxu0 %v2573_v0 }
 0x215   :  { %2237 = vmatpush3.bf16.msra.mxu1 %v2679_v30  ;;  %2261 = vmatpush3.bf16.msra.mxu0 %v2716_v59 }
 0x216   :  { %2238 = vmatprep.subr.bf16.mxu1 %v2573_v0  ;;  %2262 = vmatprep.subr.bf16.mxu0 %v2573_v0 }
 0x219   :  { %2240 = vmatpush3.bf16.msra.mxu1 %v2684_v36  ;;  %2264 = vmatpush3.bf16.msra.mxu0 %v2720_v62 }
 0x21a   :  { %2241 = vmatprep.subr.bf16.mxu1 %v2573_v0  ;;  %2265 = vmatprep.subr.bf16.mxu0 %v2573_v0 }
 0x21d   :  { %2243 = vmatpush3.bf16.msra.mxu1 %v2689_v42  ;;  %2267 = vmatpush3.bf16.msra.mxu0 %v2724_v3 }
 0x21e   :  { %2244 = vmatprep.subr.bf16.mxu1 %v2573_v0  ;;  %2268 = vmatprep.subr.bf16.mxu0 %v2573_v0 }
 0x221   :  { %2246 = vmatpush3.bf16.msra.mxu1 %v2694_v48  ;;  %2270 = vmatpush3.bf16.msra.mxu0 %v2728_v6 }
 0x222   :  { %2247 = vmatprep.subr.bf16.mxu1 %v2573_v0  ;;  %2271 = vmatprep.subr.bf16.mxu0 %v2573_v0 }
 0x225   :  { %2249 = vmatpush3.bf16.msra.mxu1 %v2733_v10  ;;  %2273 = vmatpush3.bf16.msra.mxu0 %v2735_v12 }
 0x226   :  { %2274 = vmatprep.subr.bf16.mxu1 %v2573_v0  ;;  %2298 = vmatprep.subr.bf16.mxu0 %v2573_v0 }
 0x2db   :  { %v396_v27 = vpop.f32.mrb[2].mxu1  ;;  %v468_v28 = vpop.f32.mrb[4].mxu0 }
 0x2dc   :  { %1267 = vst [vmem:[%s3015_s5 + $0x8] sm:$0xff] %v396_v27  ;;  %v469_v29 = vadd.f32 %v468_v28, %v2744_v16  ;;  %v1685_v31 = vpop.f32.mrb[3].mxu1  ;;  %v1720_v32 = vpop.f32.mrb[5].mxu0 }
 0x2de   :  { %v472_v33 = vmax.f32 %v469_v29, 0.0 }
 0x2e0   :  { %1754 = vmatmul.mubr.f32.vlgmr.msra.gmra.mrb[4].mxu1 %v472_v33  ;;  %1789 = vmatmul.mubr.f32.vlgmr.msra.gmra.mrb[6].mxu0 %v472_v33 }
 0x2e1   :  { %2276 = vmatpush3.bf16.msra.mxu1 %v2665_v13  ;;  %2300 = vmatpush3.bf16.msra.mxu0 %v2700_v50 }
 0x2e2   :  { %2277 = vmatprep.subr.bf16.mxu1 %v2573_v0  ;;  %2301 = vmatprep.subr.bf16.mxu0 %v2573_v0 }
 0x2e3   :  { %1823 = vmatprep.mubr.msk.f32.mxu1 %vm2574_vm0, %v2575_v1  ;;  %1858 = vmatprep.mubr.msk.f32.mxu0 %vm2574_vm0, %v2575_v1 }
 0x2e5   :  { %2279 = vmatpush3.bf16.msra.mxu1 %v2669_v18  ;;  %2303 = vmatpush3.bf16.msra.mxu0 %v2706_v53 }
 0x2e6   :  { %2280 = vmatprep.subr.bf16.mxu1 %v2573_v0  ;;  %2304 = vmatprep.subr.bf16.mxu0 %v2573_v0 }
 0x2e9   :  { %2282 = vmatpush3.bf16.msra.mxu1 %v2674_v24  ;;  %2306 = vmatpush3.bf16.msra.mxu0 %v2712_v56 }
 0x2ea   :  { %2283 = vmatprep.subr.bf16.mxu1 %v2573_v0  ;;  %2307 = vmatprep.subr.bf16.mxu0 %v2573_v0 }
 0x2ed   :  { %2285 = vmatpush3.bf16.msra.mxu1 %v2679_v30  ;;  %2309 = vmatpush3.bf16.msra.mxu0 %v2716_v59 }
 0x2ee   :  { %2286 = vmatprep.subr.bf16.mxu1 %v2573_v0  ;;  %2310 = vmatprep.subr.bf16.mxu0 %v2573_v0 }
 0x2f1   :  { %2288 = vmatpush3.bf16.msra.mxu1 %v2684_v36  ;;  %2312 = vmatpush3.bf16.msra.mxu0 %v2720_v62 }
 0x2f2   :  { %2289 = vmatprep.subr.bf16.mxu1 %v2573_v0  ;;  %2313 = vmatprep.subr.bf16.mxu0 %v2573_v0 }
 0x2f5   :  { %2291 = vmatpush3.bf16.msra.mxu1 %v2689_v42  ;;  %2315 = vmatpush3.bf16.msra.mxu0 %v2724_v3 }
 0x2f6   :  { %2292 = vmatprep.subr.bf16.mxu1 %v2573_v0  ;;  %2316 = vmatprep.subr.bf16.mxu0 %v2573_v0 }
 0x2f9   :  { %2294 = vmatpush3.bf16.msra.mxu1 %v2694_v48  ;;  %2318 = vmatpush3.bf16.msra.mxu0 %v2728_v6 }
 0x2fa   :  { %2295 = vmatprep.subr.bf16.mxu1 %v2573_v0  ;;  %2319 = vmatprep.subr.bf16.mxu0 %v2573_v0 }
 0x2fd   :  { %2297 = vmatpush3.bf16.msra.mxu1 %v2733_v10  ;;  %2321 = vmatpush3.bf16.msra.mxu0 %v2735_v12 }
 0x2fe   :  { %2322 = vmatprep.subr.bf16.mxu1 %v2573_v0  ;;  %2346 = vmatprep.subr.bf16.mxu0 %v2573_v0 }
 0x3b3   :  { %v539_v34 = vpop.f32.mrb[4].mxu1  ;;  %v611_v35 = vpop.f32.mrb[6].mxu0 }
 0x3b4   :  { %1268 = vst [vmem:[%s3015_s5 + $0x10] sm:$0xff] %v539_v34  ;;  %v612_v37 = vadd.f32 %v611_v35, %v2744_v16  ;;  %v1755_v38 = vpop.f32.mrb[5].mxu1  ;;  %v1790_v39 = vpop.f32.mrb[7].mxu0 }
 0x3b6   :  { %v615_v40 = vmax.f32 %v612_v37, 0.0 }
 0x3b8   :  { %1824 = vmatmul.mubr.f32.vlgmr.msra.gmra.mrb[6].mxu1 %v615_v40  ;;  %1859 = vmatmul.mubr.f32.vlgmr.msra.gmra.mrb[8].mxu0 %v615_v40 }
 0x3b9   :  { %2324 = vmatpush3.bf16.msra.mxu1 %v2665_v13  ;;  %2348 = vmatpush3.bf16.msra.mxu0 %v2700_v50 }
 0x3ba   :  { %2325 = vmatprep.subr.bf16.mxu1 %v2573_v0  ;;  %2349 = vmatprep.subr.bf16.mxu0 %v2573_v0 }
 0x3bb   :  { %1893 = vmatprep.mubr.msk.f32.mxu1 %vm2574_vm0, %v2575_v1  ;;  %1928 = vmatprep.mubr.msk.f32.mxu0 %vm2574_vm0, %v2575_v1 }
 0x3bd   :  { %2327 = vmatpush3.bf16.msra.mxu1 %v2669_v18  ;;  %2351 = vmatpush3.bf16.msra.mxu0 %v2706_v53 }
 0x3be   :  { %2328 = vmatprep.subr.bf16.mxu1 %v2573_v0  ;;  %2352 = vmatprep.subr.bf16.mxu0 %v2573_v0 }
 0x3c1   :  { %2330 = vmatpush3.bf16.msra.mxu1 %v2674_v24  ;;  %2354 = vmatpush3.bf16.msra.mxu0 %v2712_v56 }
 0x3c2   :  { %2331 = vmatprep.subr.bf16.mxu1 %v2573_v0  ;;  %2355 = vmatprep.subr.bf16.mxu0 %v2573_v0 }
 0x3c5   :  { %2333 = vmatpush3.bf16.msra.mxu1 %v2679_v30  ;;  %2357 = vmatpush3.bf16.msra.mxu0 %v2716_v59 }
 0x3c6   :  { %2334 = vmatprep.subr.bf16.mxu1 %v2573_v0  ;;  %2358 = vmatprep.subr.bf16.mxu0 %v2573_v0 }
 0x3c9   :  { %2336 = vmatpush3.bf16.msra.mxu1 %v2684_v36  ;;  %2360 = vmatpush3.bf16.msra.mxu0 %v2720_v62 }
 0x3ca   :  { %2337 = vmatprep.subr.bf16.mxu1 %v2573_v0  ;;  %2361 = vmatprep.subr.bf16.mxu0 %v2573_v0 }
 0x3cd   :  { %2339 = vmatpush3.bf16.msra.mxu1 %v2689_v42  ;;  %2363 = vmatpush3.bf16.msra.mxu0 %v2724_v3 }
 0x3ce   :  { %2340 = vmatprep.subr.bf16.mxu1 %v2573_v0  ;;  %2364 = vmatprep.subr.bf16.mxu0 %v2573_v0 }
 0x3d1   :  { %2342 = vmatpush3.bf16.msra.mxu1 %v2694_v48  ;;  %2366 = vmatpush3.bf16.msra.mxu0 %v2728_v6 }
 0x3d2   :  { %2343 = vmatprep.subr.bf16.mxu1 %v2573_v0  ;;  %2367 = vmatprep.subr.bf16.mxu0 %v2573_v0 }
 0x3d5   :  { %2345 = vmatpush3.bf16.msra.mxu1 %v2733_v10  ;;  %2369 = vmatpush3.bf16.msra.mxu0 %v2735_v12 }
 0x3d6   :  { %2370 = vmatprep.subr.bf16.mxu1 %v2573_v0  ;;  %2394 = vmatprep.subr.bf16.mxu0 %v2573_v0 }
 0x48b   :  { %v682_v41 = vpop.f32.mrb[6].mxu1  ;;  %v754_v43 = vpop.f32.mrb[8].mxu0 }
 0x48c   :  { %1269 = vst [vmem:[%s3015_s5 + $0x18] sm:$0xff] %v682_v41  ;;  %v755_v44 = vadd.f32 %v754_v43, %v2744_v16  ;;  %v1825_v45 = vpop.f32.mrb[7].mxu1  ;;  %v1860_v46 = vpop.f32.mrb[9].mxu0 }
 0x48e   :  { %v758_v47 = vmax.f32 %v755_v44, 0.0 }
 0x490   :  { %1894 = vmatmul.mubr.f32.vlgmr.msra.gmra.mrb[8].mxu1 %v758_v47  ;;  %1929 = vmatmul.mubr.f32.vlgmr.msra.gmra.mrb[10].mxu0 %v758_v47 }
 0x491   :  { %2372 = vmatpush3.bf16.msra.mxu1 %v2665_v13  ;;  %2396 = vmatpush3.bf16.msra.mxu0 %v2700_v50 }
 0x492   :  { %2373 = vmatprep.subr.bf16.mxu1 %v2573_v0  ;;  %2397 = vmatprep.subr.bf16.mxu0 %v2573_v0 }
 0x493   :  { %1963 = vmatprep.mubr.msk.f32.mxu1 %vm2574_vm0, %v2575_v1  ;;  %1998 = vmatprep.mubr.msk.f32.mxu0 %vm2574_vm0, %v2575_v1 }
 0x495   :  { %2375 = vmatpush3.bf16.msra.mxu1 %v2669_v18  ;;  %2399 = vmatpush3.bf16.msra.mxu0 %v2706_v53 }
 0x496   :  { %2376 = vmatprep.subr.bf16.mxu1 %v2573_v0  ;;  %2400 = vmatprep.subr.bf16.mxu0 %v2573_v0 }
 0x499   :  { %2378 = vmatpush3.bf16.msra.mxu1 %v2674_v24  ;;  %2402 = vmatpush3.bf16.msra.mxu0 %v2712_v56 }
 0x49a   :  { %2379 = vmatprep.subr.bf16.mxu1 %v2573_v0  ;;  %2403 = vmatprep.subr.bf16.mxu0 %v2573_v0 }
 0x49d   :  { %2381 = vmatpush3.bf16.msra.mxu1 %v2679_v30  ;;  %2405 = vmatpush3.bf16.msra.mxu0 %v2716_v59 }
 0x49e   :  { %2382 = vmatprep.subr.bf16.mxu1 %v2573_v0  ;;  %2406 = vmatprep.subr.bf16.mxu0 %v2573_v0 }
 0x4a1   :  { %2384 = vmatpush3.bf16.msra.mxu1 %v2684_v36  ;;  %2408 = vmatpush3.bf16.msra.mxu0 %v2720_v62 }
 0x4a2   :  { %2385 = vmatprep.subr.bf16.mxu1 %v2573_v0  ;;  %2409 = vmatprep.subr.bf16.mxu0 %v2573_v0 }
 0x4a5   :  { %2387 = vmatpush3.bf16.msra.mxu1 %v2689_v42  ;;  %2411 = vmatpush3.bf16.msra.mxu0 %v2724_v3 }
 0x4a6   :  { %2388 = vmatprep.subr.bf16.mxu1 %v2573_v0  ;;  %2412 = vmatprep.subr.bf16.mxu0 %v2573_v0 }
 0x4a9   :  { %2390 = vmatpush3.bf16.msra.mxu1 %v2694_v48  ;;  %2414 = vmatpush3.bf16.msra.mxu0 %v2728_v6 }
 0x4aa   :  { %2391 = vmatprep.subr.bf16.mxu1 %v2573_v0  ;;  %2415 = vmatprep.subr.bf16.mxu0 %v2573_v0 }
 0x4ad   :  { %2393 = vmatpush3.bf16.msra.mxu1 %v2733_v10  ;;  %2417 = vmatpush3.bf16.msra.mxu0 %v2735_v12 }
 0x4ae   :  { %2418 = vmatprep.subr.bf16.mxu1 %v2573_v0  ;;  %2442 = vmatprep.subr.bf16.mxu0 %v2573_v0 }
 0x563   :  { %v825_v49 = vpop.f32.mrb[8].mxu1  ;;  %v897_v51 = vpop.f32.mrb[10].mxu0 }
 0x564   :  { %1270 = vst [vmem:[%s3015_s5 + $0x20] sm:$0xff] %v825_v49  ;;  %v898_v52 = vadd.f32 %v897_v51, %v2744_v16  ;;  %v1895_v54 = vpop.f32.mrb[9].mxu1  ;;  %v1930_v55 = vpop.f32.mrb[11].mxu0 }
 0x566   :  { %v901_v57 = vmax.f32 %v898_v52, 0.0 }
 0x568   :  { %1964 = vmatmul.mubr.f32.vlgmr.msra.gmra.mrb[10].mxu1 %v901_v57  ;;  %1999 = vmatmul.mubr.f32.vlgmr.msra.gmra.mrb[12].mxu0 %v901_v57 }
 0x569   :  { %2420 = vmatpush3.bf16.msra.mxu1 %v2665_v13  ;;  %2444 = vmatpush3.bf16.msra.mxu0 %v2700_v50 }
 0x56a   :  { %2421 = vmatprep.subr.bf16.mxu1 %v2573_v0  ;;  %2445 = vmatprep.subr.bf16.mxu0 %v2573_v0 }
 0x56b   :  { %2033 = vmatprep.mubr.msk.f32.mxu1 %vm2574_vm0, %v2575_v1  ;;  %2068 = vmatprep.mubr.msk.f32.mxu0 %vm2574_vm0, %v2575_v1 }
 0x56d   :  { %2423 = vmatpush3.bf16.msra.mxu1 %v2669_v18  ;;  %2447 = vmatpush3.bf16.msra.mxu0 %v2706_v53 }
 0x56e   :  { %2424 = vmatprep.subr.bf16.mxu1 %v2573_v0  ;;  %2448 = vmatprep.subr.bf16.mxu0 %v2573_v0 }
 0x571   :  { %2426 = vmatpush3.bf16.msra.mxu1 %v2674_v24  ;;  %2450 = vmatpush3.bf16.msra.mxu0 %v2712_v56 }
 0x572   :  { %2427 = vmatprep.subr.bf16.mxu1 %v2573_v0  ;;  %2451 = vmatprep.subr.bf16.mxu0 %v2573_v0 }
 0x575   :  { %2429 = vmatpush3.bf16.msra.mxu1 %v2679_v30  ;;  %2453 = vmatpush3.bf16.msra.mxu0 %v2716_v59 }
 0x576   :  { %2430 = vmatprep.subr.bf16.mxu1 %v2573_v0  ;;  %2454 = vmatprep.subr.bf16.mxu0 %v2573_v0 }
 0x579   :  { %2432 = vmatpush3.bf16.msra.mxu1 %v2684_v36  ;;  %2456 = vmatpush3.bf16.msra.mxu0 %v2720_v62 }
 0x57a   :  { %2433 = vmatprep.subr.bf16.mxu1 %v2573_v0  ;;  %2457 = vmatprep.subr.bf16.mxu0 %v2573_v0 }
 0x57d   :  { %2435 = vmatpush3.bf16.msra.mxu1 %v2689_v42  ;;  %2459 = vmatpush3.bf16.msra.mxu0 %v2724_v3 }
 0x57e   :  { %2436 = vmatprep.subr.bf16.mxu1 %v2573_v0  ;;  %2460 = vmatprep.subr.bf16.mxu0 %v2573_v0 }
 0x581   :  { %2438 = vmatpush3.bf16.msra.mxu1 %v2694_v48  ;;  %2462 = vmatpush3.bf16.msra.mxu0 %v2728_v6 }
 0x582   :  { %2439 = vmatprep.subr.bf16.mxu1 %v2573_v0  ;;  %2463 = vmatprep.subr.bf16.mxu0 %v2573_v0 }
 0x585   :  { %2441 = vmatpush3.bf16.msra.mxu1 %v2733_v10  ;;  %2465 = vmatpush3.bf16.msra.mxu0 %v2735_v12 }
 0x586   :  { %2466 = vmatprep.subr.bf16.mxu1 %v2573_v0 }
 0x63b   :  { %v968_v50 = vpop.f32.mrb[10].mxu1  ;;  %v1040_v53 = vpop.f32.mrb[12].mxu0 }
 0x63c   :  { %1271 = vst [vmem:[%s3015_s5 + $0x28] sm:$0xff] %v968_v50  ;;  %v1041_v56 = vadd.f32 %v1040_v53, %v2744_v16  ;;  %v1965_v58 = vpop.f32.mrb[11].mxu1  ;;  %v2000_v59 = vpop.f32.mrb[13].mxu0 }
 0x63e   :  { %v1044_v60 = vmax.f32 %v1041_v56, 0.0 }
 0x640   :  { %2034 = vmatmul.mubr.f32.vlgmr.msra.gmra.mrb[12].mxu1 %v1044_v60  ;;  %2069 = vmatmul.mubr.f32.vlgmr.msra.gmra.mrb[14].mxu0 %v1044_v60 }
 0x641   :  { %2468 = vmatpush3.bf16.msra.mxu1 %v2665_v13  ;;  %2103 = vmatprep.mubr.msk.f32.mxu1 %vm2574_vm0, %v2575_v1 }
 0x642   :  { %2469 = vmatprep.subr.bf16.mxu1 %v2573_v0 }
 0x645   :  { %2471 = vmatpush3.bf16.msra.mxu1 %v2669_v18 }
 0x646   :  { %2472 = vmatprep.subr.bf16.mxu1 %v2573_v0 }
 0x649   :  { %2474 = vmatpush3.bf16.msra.mxu1 %v2674_v24 }
 0x64a   :  { %2475 = vmatprep.subr.bf16.mxu1 %v2573_v0 }
 0x64d   :  { %2477 = vmatpush3.bf16.msra.mxu1 %v2679_v30 }
 0x64e   :  { %2478 = vmatprep.subr.bf16.mxu1 %v2573_v0 }
 0x651   :  { %2480 = vmatpush3.bf16.msra.mxu1 %v2684_v36 }
 0x652   :  { %2481 = vmatprep.subr.bf16.mxu1 %v2573_v0 }
 0x655   :  { %2483 = vmatpush3.bf16.msra.mxu1 %v2689_v42 }
 0x656   :  { %2484 = vmatprep.subr.bf16.mxu1 %v2573_v0 }
 0x659   :  { %2486 = vmatpush3.bf16.msra.mxu1 %v2694_v48 }
 0x65a   :  { %2487 = vmatprep.subr.bf16.mxu1 %v2573_v0 }
 0x65d   :  { %2489 = vmatpush3.bf16.msra.mxu1 %v2733_v10 }
 0x713   :  { %v1111_v1 = vpop.f32.mrb[12].mxu1  ;;  %v1183_v13 = vpop.f32.mrb[14].mxu0 }
 0x714   :  { %1272 = vst [vmem:[%s3015_s5 + $0x30] sm:$0xff] %v1111_v1  ;;  %v1184_v18 = vadd.f32 %v1183_v13, %v2744_v16  ;;  %v2035_v24 = vpop.f32.mrb[13].mxu1  ;;  %v2070_v30 = vpop.f32.mrb[15].mxu0 }
 0x716   :  { %v1187_v36 = vmax.f32 %v1184_v18, 0.0 }
 0x718   :  { %2104 = vmatmul.mubr.f32.vlgmr.msra.gmra.mrb[14].mxu1 %v1187_v36 }
 0x7eb   :  { %v1254_v42 = vpop.f32.mrb[14].mxu1 }
 0x7ec   :  { %1273 = vst [vmem:[%s3015_s5 + $0x38] sm:$0xff] %v1254_v42  ;;  %v2105_v0 = vpop.f32.mrb[15].mxu1 }
 0x7ed   :  { %1264 = vsyncpa [#allocation3], 1 }
 0x7ee   :  { %1265 = vsyncpa [#allocation5], 1 }

</bundles_post_ra>
